<compile_context>
chip_gen: v7x
topology: tpu7x:2x2x1
jax: 0.10.0
libtpu: 0.0.40
codegen_flags: <defaults>
</compile_context>

<pallas_src>
import functools

import jax
import jax.numpy as jnp
import numpy as np
from jax.experimental import pallas as pl
from jax.experimental.pallas import tpu as pltpu

EPS = 1e-5                                  # PyTorch BatchNorm1d default
VMEM_LIMIT = 48 * 1024 * 1024               # fits v7x 64 MiB physical VMEM with headroom


# ----------------------------------------------------------------------------
# helpers
# ----------------------------------------------------------------------------

def _row_tile(n, target):
    """Largest tile <= target that divides n and is a multiple of 8 (else n)."""
    if n <= target:
        return n
    t = (min(target, n) // 8) * 8
    while t >= 8:
        if n % t == 0:
            return t
        t -= 8
    # TODO(synk): awkward n (no multiple-of-8 divisor) falls back to one whole-axis
    # tile; for very large n this can exceed the VMEM budget instead of erroring.
    return n


# ----------------------------------------------------------------------------
# kernel 1: fused QKV projection (x @ W + b) + BN partial statistics
# ----------------------------------------------------------------------------

def _proj_kernel(x_ref, w_ref, b_ref, y_ref, p1_ref, p2_ref, *, compute_dtype):
    # x: (TR, din)  w: (din, C) in compute_dtype  b: (1, C) f32
    x = x_ref[...].astype(compute_dtype)
    y = jnp.dot(x, w_ref[...], preferred_element_type=jnp.float32) + b_ref[...]
    y_ref[...] = y.astype(y_ref.dtype)
    # per-tile partial sums for the BatchNorm batch statistics (f32 accumulation).
    # NOTE: var = E[y^2] - E[y]^2 with a max(.,0) guard; channel offsets here are
    # modest so f32 cancellation is benign.
    p1_ref[...] = jnp.sum(y, axis=0, keepdims=True)
    p2_ref[...] = jnp.sum(y * y, axis=0, keepdims=True)


def project_bn(x_stk, w_stk, b_stk, gamma_stk, beta_stk, *,
               compute_dtype, row_tile=512):
    """x_stk: (G, N, din)  w_stk: (G, din, C)  b/gamma/beta: (G, 1, C).

    Returns y (G, N, C) un-normalized (stored in compute_dtype) and per-channel
    BN scale/shift (G, 1, C) such that BN(y) == y * scale + shift.
    """
    G, N, din = x_stk.shape
    C = w_stk.shape[-1]
    TR = _row_tile(N, row_tile)
    nt = N // TR

    kern = functools.partial(_proj_kernel, compute_dtype=compute_dtype)
    y, p1, p2 = pl.pallas_call(
        kern,
        # large (row-tile) axis first -> balanced split across v7x's 2 TensorCores
        grid=(nt, G),
        in_specs=[
            pl.BlockSpec((None, TR, din), lambda r, g: (g, r, 0)),
            pl.BlockSpec((None, din, C), lambda r, g: (g, 0, 0)),
            pl.BlockSpec((None, 1, C), lambda r, g: (g, 0, 0)),
        ],
        out_specs=[
            pl.BlockSpec((None, TR, C), lambda r, g: (g, r, 0)),
            pl.BlockSpec((None, None, 1, C), lambda r, g: (g, r, 0, 0)),
            pl.BlockSpec((None, None, 1, C), lambda r, g: (g, r, 0, 0)),
        ],
        out_shape=[
            jax.ShapeDtypeStruct((G, N, C), compute_dtype),
            jax.ShapeDtypeStruct((G, nt, 1, C), jnp.float32),
            jax.ShapeDtypeStruct((G, nt, 1, C), jnp.float32),
        ],
        compiler_params=pltpu.CompilerParams(
            dimension_semantics=("parallel", "parallel"),
            vmem_limit_bytes=VMEM_LIMIT),
    )(x_stk, w_stk.astype(compute_dtype), b_stk)

    # tiny (G, 1, C) host-side reduction + affine fold (param-sized, not activation-sized)
    s1 = p1.sum(axis=1) / N                   # mean        (G, 1, C)
    s2 = p2.sum(axis=1) / N                   # E[y^2]
    var = jnp.maximum(s2 - s1 * s1, 0.0)      # biased (training) variance
    rstd = jax.lax.rsqrt(var + EPS)
    scale = gamma_stk * rstd
    shift = beta_stk - s1 * scale
    return y, scale, shift


# ----------------------------------------------------------------------------
# kernel 2: flash attention (BN-apply + online softmax + head merge + BN partials)
# ----------------------------------------------------------------------------

def _attn_kernel(yq_ref, yk_ref, yv_ref, scale_ref, shift_ref,
                 o_ref, s1_ref, s2_ref,
                 m_sc, l_sc, acc_sc, *, head, head_dim, compute_dtype):
    # yq: (TQ, C)   yk/yv: (TK, C)   scale/shift: (3, 1, C)   o: (TQ, C)
    ki = pl.program_id(2)

    @pl.when(ki == 0)
    def _init():
        m_sc[...] = jnp.full(m_sc.shape, -jnp.inf, dtype=m_sc.dtype)
        l_sc[...] = jnp.zeros(l_sc.shape, dtype=l_sc.dtype)
        acc_sc[...] = jnp.zeros(acc_sc.shape, dtype=acc_sc.dtype)

    # projection BatchNorm folded to per-channel scale/shift, applied on the fly
    # (q's affine already carries the 1/sqrt(head_dim) attention scaling).
    q = (yq_ref[...] * scale_ref[0] + shift_ref[0]).astype(compute_dtype)
    k = (yk_ref[...] * scale_ref[1] + shift_ref[1]).astype(compute_dtype)
    v = (yv_ref[...] * scale_ref[2] + shift_ref[2]).astype(compute_dtype)

    for h in range(head):                     # static unroll over heads
        sl = slice(h * head_dim, (h + 1) * head_dim)
        # contract native last dims (no in-kernel transpose); f32 accumulation
        s = jax.lax.dot_general(q[:, sl], k[:, sl], (((1,), (1,)), ((), ())),
                                preferred_element_type=jnp.float32)   # (TQ, TK)
        m_prev = m_sc[h]                                              # (TQ, 1)
        m_new = jnp.maximum(m_prev, jnp.max(s, axis=-1, keepdims=True))
        alpha = jnp.exp(m_prev - m_new)
        p = jnp.exp(s - m_new)
        l_sc[h] = alpha * l_sc[h] + jnp.sum(p, axis=-1, keepdims=True)
        acc_sc[h] = alpha * acc_sc[h] + jnp.dot(
            p.astype(compute_dtype), v[:, sl], preferred_element_type=jnp.float32)
        m_sc[h] = m_new

    @pl.when(ki == pl.num_programs(2) - 1)
    def _finalize():
        for h in range(head):
            sl = slice(h * head_dim, (h + 1) * head_dim)
            # exact normalization (once per output tile; rows sum to exactly 1)
            oh = acc_sc[h] / l_sc[h]                                  # (TQ, Dh) f32
            # write this head's columns straight into the merged output block
            o_ref[:, sl] = oh.astype(o_ref.dtype)
            # per-(batch, q-tile) partial sums for the final BatchNorm
            s1_ref[:, sl] = jnp.sum(oh, axis=0, keepdims=True)
            s2_ref[:, sl] = jnp.sum(oh * oh, axis=0, keepdims=True)


def fused_attention(yq4, yk4, yv4, iq, ik, iv, scale_stk, shift_stk,
                    head, head_dim, *, compute_dtype, q_tile=256, k_tile=512):
    """yq4/yk4/yv4: (G, B, S, C) projection outputs (may be the same array);
    iq/ik/iv select the projection along the leading axis."""
    _, B, Sq, C = yq4.shape
    Sk = yk4.shape[2]
    TQ = _row_tile(Sq, q_tile)
    TK = _row_tile(Sk, k_tile)
    nq, nk = Sq // TQ, Sk // TK

    kern = functools.partial(_attn_kernel, head=head, head_dim=head_dim,
                             compute_dtype=compute_dtype)

    def build_and_run(kv_buffers):
        def kv_spec(sel):
            idx = lambda b, qi, ki, _s=sel: (_s, b, ki, 0)
            if kv_buffers > 2:
                return pl.BlockSpec((None, None, TK, C), idx,
                                    pipeline_mode=pl.Buffered(kv_buffers))
            return pl.BlockSpec((None, None, TK, C), idx)

        return pl.pallas_call(
            kern,
            grid=(B, nq, nk),                       # K/V reduction axis innermost
            in_specs=[
                pl.BlockSpec((None, None, TQ, C), lambda b, qi, ki: (iq, b, qi, 0)),
                kv_spec(ik),
                kv_spec(iv),
                pl.BlockSpec((3, 1, C), lambda b, qi, ki: (0, 0, 0)),
                pl.BlockSpec((3, 1, C), lambda b, qi, ki: (0, 0, 0)),
            ],
            out_specs=[
                pl.BlockSpec((None, TQ, C), lambda b, qi, ki: (b, qi, 0)),
                pl.BlockSpec((None, None, 1, C), lambda b, qi, ki: (b, qi, 0, 0)),
                pl.BlockSpec((None, None, 1, C), lambda b, qi, ki: (b, qi, 0, 0)),
            ],
            out_shape=[
                jax.ShapeDtypeStruct((B, Sq, C), compute_dtype),
                jax.ShapeDtypeStruct((B, nq, 1, C), jnp.float32),
                jax.ShapeDtypeStruct((B, nq, 1, C), jnp.float32),
            ],
            scratch_shapes=[
                pltpu.VMEM((head, TQ, 1), jnp.float32),         # running max  m
                pltpu.VMEM((head, TQ, 1), jnp.float32),         # running sum  l
                pltpu.VMEM((head, TQ, head_dim), jnp.float32),  # running numerator
            ],
            compiler_params=pltpu.CompilerParams(
                dimension_semantics=("parallel", "parallel", "arbitrary"),
                vmem_limit_bytes=VMEM_LIMIT),
        )(yq4, yk4, yv4, scale_stk, shift_stk)

    if nk >= 3:
        try:    # deeper K/V buffering hides small-tile DMA latency; fall back if rejected
            return build_and_run(3)
        except Exception:
            pass
    return build_and_run(2)


# ----------------------------------------------------------------------------
# kernel 3: final BatchNorm apply (scale/shift precomputed from partials)
# ----------------------------------------------------------------------------

def _bn_apply_kernel(x_ref, scale_ref, shift_ref, o_ref):
    o_ref[...] = x_ref[...] * scale_ref[...] + shift_ref[...]


def _bn_apply_call(x2d, scale2d, shift2d, row_tile):
    N, C = x2d.shape
    TR = _row_tile(N, row_tile)
    nt = N // TR
    return pl.pallas_call(
        _bn_apply_kernel,
        grid=(nt,),
        in_specs=[
            pl.BlockSpec((TR, C), lambda r: (r, 0)),
            pl.BlockSpec((1, C), lambda r: (0, 0)),
            pl.BlockSpec((1, C), lambda r: (0, 0)),
        ],
        out_specs=pl.BlockSpec((TR, C), lambda r: (r, 0)),
        out_shape=jax.ShapeDtypeStruct((N, C), jnp.float32),
        compiler_params=pltpu.CompilerParams(
            dimension_semantics=("parallel",),
            vmem_limit_bytes=VMEM_LIMIT),
    )(x2d, scale2d, shift2d)


def bn_apply(x2d, scale, shift, row_tile=1024):
    """y = x*scale + shift per channel.  If C < 128 the activation is viewed as a
    128-lane-dense (N*C/128, 128) slab (free row-major reshape) with lane-tiled
    scale/shift so stores are unmasked full-lane vst's."""
    N, C = x2d.shape
    scale = scale.reshape(1, C)
    shift = shift.reshape(1, C)
    if C < 128 and 128 % C == 0 and (N * C) % 128 == 0:
        rep = 128 // C
        R = (N * C) // 128
        xr = x2d.reshape(R, 128)
        out = _bn_apply_call(xr, jnp.tile(scale, (1, rep)), jnp.tile(shift, (1, rep)),
                             row_tile)
        return out.reshape(N, C)
    return _bn_apply_call(x2d, scale, shift, row_tile)


# ----------------------------------------------------------------------------
# full forward
# ----------------------------------------------------------------------------

def attention_forward(params, Q, K, V, head, head_dim, *,
                      compute_dtype=jnp.bfloat16,
                      row_tile=512, q_tile=256, k_tile=512):
    """Attention.forward(Q, K, V) with embed_dim == head_dim (required by split_head).

    compute_dtype: dtype of MXU operands and of the intermediate activations
    stored between kernels (bfloat16 = production default; float32 = exact
    parity with the f32 PyTorch reference).  All accumulation and BN statistics
    stay in float32 regardless.
    """
    B, Sq, dq = Q.shape
    _, Sk, dk = K.shape
    dv = V.shape[-1]
    C = head * head_dim

    # pre-transpose weights once on the host -> kernels contract native last dims
    wq_t, wk_t, wv_t = params["wq"].T, params["wk"].T, params["wv"].T   # (din, C)

    fusable = (dq == dk == dv) and (Sq == Sk)
    if fusable:
        # one fused launch for the three projections (projection axis of size 3)
        x_stk = jnp.stack([Q.reshape(B * Sq, dq),
                           K.reshape(B * Sk, dk),
                           V.reshape(B * Sk, dv)], axis=0)
        w_stk = jnp.stack([wq_t, wk_t, wv_t], axis=0)
        b_stk = jnp.stack([params["bq"], params["bk"], params["bv"]])[:, None, :]
        g_stk = jnp.stack([params["gq"], params["gk"], params["gv"]])[:, None, :]
        be_stk = jnp.stack([params["betaq"], params["betak"], params["betav"]])[:, None, :]
        y, scale, shift = project_bn(x_stk, w_stk, b_stk, g_stk, be_stk,
                                     compute_dtype=compute_dtype, row_tile=row_tile)
        y4 = y.reshape(3, B, Sq, C)              # free reshape, no copy
        yq4 = yk4 = yv4 = y4
        iq, ik, iv = 0, 1, 2
    else:
        # cross-attention with differing feature dims / sequence lengths:
        # one launch per projection (same kernel, leading axis of size 1).
        def one(x, wt, b, g, be, S):
            yy, sc, sh = project_bn(x.reshape(1, B * S, -1), wt[None],
                                    b[None, None, :], g[None, None, :],
                                    be[None, None, :],
                                    compute_dtype=compute_dtype, row_tile=row_tile)
            return yy.reshape(1, B, S, C), sc, sh
        yq4, sc_q, sh_q = one(Q, wq_t, params["bq"], params["gq"], params["betaq"], Sq)
        yk4, sc_k, sh_k = one(K, wk_t, params["bk"], params["gk"], params["betak"], Sk)
        yv4, sc_v, sh_v = one(V, wv_t, params["bv"], params["gv"], params["betav"], Sk)
        scale = jnp.concatenate([sc_q, sc_k, sc_v], axis=0)
        shift = jnp.concatenate([sh_q, sh_k, sh_v], axis=0)
        iq = ik = iv = 0

    # fold the 1/sqrt(head_dim) attention scale into q's BN affine (tiny host op)
    inv = 1.0 / float(head_dim) ** 0.5
    scale = scale.at[0].multiply(inv)
    shift = shift.at[0].multiply(inv)

    o, p1, p2 = fused_attention(yq4, yk4, yv4, iq, ik, iv, scale, shift,
                                head, head_dim, compute_dtype=compute_dtype,
                                q_tile=q_tile, k_tile=k_tile)

    # final BatchNorm1d(C): global stats from the per-(batch, q-tile) partials
    n = B * Sq
    mean = p1.reshape(-1, C).sum(axis=0) / n
    ex2 = p2.reshape(-1, C).sum(axis=0) / n
    var = jnp.maximum(ex2 - mean * mean, 0.0)
    rstd = jax.lax.rsqrt(var + EPS)
    oscale = params["go"] * rstd
    oshift = params["betao"] - mean * oscale

    out = bn_apply(o.reshape(B * Sq, C), oscale, oshift)
    return out.reshape(B, Sq, C)


# ----------------------------------------------------------------------------
# pure-JAX reference (mirrors the PyTorch module in training mode)
# ----------------------------------------------------------------------------

def _ref_forward(params, Q, K, V, head, head_dim):
    def lin_bn(x, w, b, g, be):
        y = x @ w.T + b
        f = y.reshape(-1, y.shape[-1])
        mean = f.mean(0)
        var = ((f - mean) ** 2).mean(0)              # biased (training) variance
        return g * (y - mean) / jnp.sqrt(var + EPS) + be

    B, Sq, _ = Q.shape
    Sk = K.shape[1]
    q = lin_bn(Q, params["wq"], params["bq"], params["gq"], params["betaq"])
    k = lin_bn(K, params["wk"], params["bk"], params["gk"], params["betak"])
    v = lin_bn(V, params["wv"], params["bv"], params["gv"], params["betav"])
    q = q.reshape(B, Sq, head, head_dim).transpose(0, 2, 1, 3)
    k = k.reshape(B, Sk, head, head_dim).transpose(0, 2, 1, 3)
    v = v.reshape(B, Sk, head, head_dim).transpose(0, 2, 1, 3)
    s = jnp.einsum("bhqd,bhkd->bhqk", q, k) / (head_dim ** 0.5)
    p = jax.nn.softmax(s, axis=-1)
    o = jnp.einsum("bhqk,bhkd->bhqd", p, v)
    o = o.transpose(0, 2, 1, 3).reshape(B, Sq, head * head_dim)
    f = o.reshape(-1, head * head_dim)
    mean = f.mean(0)
    var = ((f - mean) ** 2).mean(0)
    return params["go"] * (o - mean) / jnp.sqrt(var + EPS) + params["betao"]


# ----------------------------------------------------------------------------
# main
# ----------------------------------------------------------------------------

def make_params(key, dq, dk, dv, C):
    ks = jax.random.split(key, 14)
    def w(k, o, i): return jax.random.normal(k, (o, i), jnp.float32) * 0.1
    def b(k, o): return jax.random.normal(k, (o,), jnp.float32) * 0.01
    def g(k, o): return 1.0 + 0.1 * jax.random.normal(k, (o,), jnp.float32)
    def be(k, o): return 0.05 * jax.random.normal(k, (o,), jnp.float32)
    return {
        "wq": w(ks[0], C, dq), "bq": b(ks[1], C), "gq": g(ks[2], C), "betaq": be(ks[3], C),
        "wk": w(ks[4], C, dk), "bk": b(ks[5], C), "gk": g(ks[6], C), "betak": be(ks[7], C),
        "wv": w(ks[8], C, dv), "bv": b(ks[9], C), "gv": g(ks[10], C), "betav": be(ks[11], C),
        "go": g(ks[12], C), "betao": be(ks[13], C),
    }


if __name__ == "__main__":
    key = jax.random.PRNGKey(0)
    head, head_dim = 2, 8          # embed_dim == head_dim (required by split_head)
    C = head * head_dim

    # ---- config 1: fused QKV path, flash tiling exercised (TQ=TK=8), exact f32 MXU ----
    B, S, D = 2, 16, 16
    k0, k1, k2, k3, key = jax.random.split(key, 5)
    params = make_params(k0, D, D, D, C)
    Q = jax.random.normal(k1, (B, S, D), jnp.float32)
    K = jax.random.normal(k2, (B, S, D), jnp.float32)
    V = jax.random.normal(k3, (B, S, D), jnp.float32)
    out = jax.block_until_ready(attention_forward(
        params, Q, K, V, head, head_dim,
        compute_dtype=jnp.float32, row_tile=16, q_tile=8, k_tile=8))
    ref = jax.block_until_ready(_ref_forward(params, Q, K, V, head, head_dim))
    np.testing.assert_allclose(np.asarray(out), np.asarray(ref), rtol=2e-3, atol=2e-3)
    assert out.shape == (B, S, C)

    # ---- config 2: cross-attention (different dims / seq lens), 3 K-tiles, f32 MXU ----
    B2, Sq2, Sk2 = 2, 8, 24
    dq2, dk2, dv2 = 12, 12, 20
    k0, k1, k2, k3, key = jax.random.split(key, 5)
    params2 = make_params(k0, dq2, dk2, dv2, C)
    Q2 = jax.random.normal(k1, (B2, Sq2, dq2), jnp.float32)
    K2 = jax.random.normal(k2, (B2, Sk2, dk2), jnp.float32)
    V2 = jax.random.normal(k3, (B2, Sk2, dv2), jnp.float32)
    out2 = jax.block_until_ready(attention_forward(
        params2, Q2, K2, V2, head, head_dim,
        compute_dtype=jnp.float32, q_tile=8, k_tile=8))
    ref2 = jax.block_until_ready(_ref_forward(params2, Q2, K2, V2, head, head_dim))
    np.testing.assert_allclose(np.asarray(out2), np.asarray(ref2), rtol=2e-3, atol=2e-3)
    assert out2.shape == (B2, Sq2, C)

    # ---- config 3: bf16 MXU operands / bf16 intermediates (production default) ----
    # bf16 rounding of Q/K/V projections and softmax weights puts the output in a
    # ~1e-2 relative band vs. the f32 reference; assert the loose bf16 tolerance.
    out3 = jax.block_until_ready(attention_forward(
        params, Q, K, V, head, head_dim,
        compute_dtype=jnp.bfloat16, row_tile=16))
    np.testing.assert_allclose(np.asarray(out3), np.asarray(ref), rtol=1e-1, atol=1e-1)
    assert out3.shape == (B, S, C)

    print("KERNEL_OK")
</pallas_src>

<mosaic_0001>
module attributes {stable_mosaic.version = 11 : i64} {
  func.func @_proj_kernel(%arg0: i32, %arg1: i32, %arg2: memref<1x16x16xf32, #tpu.memory_space<vmem>>, %arg3: memref<1x16x16xf32, #tpu.memory_space<vmem>>, %arg4: memref<1x1x16xf32, #tpu.memory_space<vmem>>, %arg5: memref<1x16x16xf32, #tpu.memory_space<vmem>>, %arg6: memref<1x1x1x16xf32, #tpu.memory_space<vmem>>, %arg7: memref<1x1x1x16xf32, #tpu.memory_space<vmem>>) attributes {dimension_semantics = [#tpu.dimension_semantics<parallel>, #tpu.dimension_semantics<parallel>], iteration_bounds = array<i64: 2, 3>, scalar_prefetch = 0 : i64, scratch_operands = 0 : i64, tpu.core_type = #tpu.core_type<tc>, window_params = [{transform_indices = @transform_0, window_bounds = array<i64: 1, 16, 16>}, {transform_indices = @transform_1, window_bounds = array<i64: 1, 16, 16>}, {transform_indices = @transform_2, window_bounds = array<i64: 1, 1, 16>}, {transform_indices = @transform_3, window_bounds = array<i64: 1, 16, 16>}, {transform_indices = @transform_4, window_bounds = array<i64: 1, 1, 1, 16>}, {transform_indices = @transform_5, window_bounds = array<i64: 1, 1, 1, 16>}]} {
    %c0 = arith.constant 0 : index
    %c0_0 = arith.constant 0 : index
    %c0_1 = arith.constant 0 : index
    %0 = vector.load %arg2[%c0, %c0_0, %c0_1] : memref<1x16x16xf32, #tpu.memory_space<vmem>>, vector<1x16x16xf32>
    %1 = vector.shape_cast %0 : vector<1x16x16xf32> to vector<16x16xf32>
    %c0_2 = arith.constant 0 : index
    %c0_3 = arith.constant 0 : index
    %c0_4 = arith.constant 0 : index
    %2 = vector.load %arg3[%c0_2, %c0_3, %c0_4] : memref<1x16x16xf32, #tpu.memory_space<vmem>>, vector<1x16x16xf32>
    %3 = vector.shape_cast %2 : vector<1x16x16xf32> to vector<16x16xf32>
    %cst = arith.constant dense<0.000000e+00> : vector<16x16xf32>
    %4 = tpu.matmul %1, %3, %cst {dimension_numbers = #tpu.dot_dimension_numbers<[1], [0], [0], [1], [0, 0, 1, 1], [], []>} : vector<16x16xf32>, vector<16x16xf32>, vector<16x16xf32> -> vector<16x16xf32>
    %c0_5 = arith.constant 0 : index
    %c0_6 = arith.constant 0 : index
    %c0_7 = arith.constant 0 : index
    %5 = vector.load %arg4[%c0_5, %c0_6, %c0_7] : memref<1x1x16xf32, #tpu.memory_space<vmem>>, vector<1x1x16xf32>
    %6 = vector.shape_cast %5 : vector<1x1x16xf32> to vector<1x16xf32>
    %7 = vector.broadcast %6 : vector<1x16xf32> to vector<16x16xf32>
    %8 = arith.addf %4, %7 : vector<16x16xf32>
    %c0_8 = arith.constant 0 : index
    %c0_9 = arith.constant 0 : index
    %c0_10 = arith.constant 0 : index
    %9 = vector.load %arg5[%c0_8, %c0_9, %c0_10] : memref<1x16x16xf32, #tpu.memory_space<vmem>>, vector<1x16x16xf32>
    %10 = vector.shape_cast %9 : vector<1x16x16xf32> to vector<16x16xf32>
    %11 = vector.shape_cast %8 : vector<16x16xf32> to vector<1x16x16xf32>
    tpu.vector_store %arg5[%c0_8, %c0_9, %c0_10], %11 {strides = array<i32>} : memref<1x16x16xf32, #tpu.memory_space<vmem>>, vector<1x16x16xf32>,
    %cst_11 = arith.constant dense<0.000000e+00> : vector<16xf32>
    %12 = vector.multi_reduction <add>, %8, %cst_11 [0] : vector<16x16xf32> to vector<16xf32>
    %13 = vector.shape_cast %12 : vector<16xf32> to vector<1x16xf32>
    %c0_12 = arith.constant 0 : index
    %c0_13 = arith.constant 0 : index
    %c0_14 = arith.constant 0 : index
    %c0_15 = arith.constant 0 : index
    %14 = vector.load %arg6[%c0_12, %c0_13, %c0_14, %c0_15] : memref<1x1x1x16xf32, #tpu.memory_space<vmem>>, vector<1x1x1x16xf32>
    %15 = vector.shape_cast %14 : vector<1x1x1x16xf32> to vector<1x16xf32>
    %16 = vector.shape_cast %13 : vector<1x16xf32> to vector<1x1x1x16xf32>
    tpu.vector_store %arg6[%c0_12, %c0_13, %c0_14, %c0_15], %16 {strides = array<i32>} : memref<1x1x1x16xf32, #tpu.memory_space<vmem>>, vector<1x1x1x16xf32>,
    %17 = arith.mulf %8, %8 : vector<16x16xf32>
    %cst_16 = arith.constant dense<0.000000e+00> : vector<16xf32>
    %18 = vector.multi_reduction <add>, %17, %cst_16 [0] : vector<16x16xf32> to vector<16xf32>
    %19 = vector.shape_cast %18 : vector<16xf32> to vector<1x16xf32>
    %c0_17 = arith.constant 0 : index
    %c0_18 = arith.constant 0 : index
    %c0_19 = arith.constant 0 : index
    %c0_20 = arith.constant 0 : index
    %20 = vector.load %arg7[%c0_17, %c0_18, %c0_19, %c0_20] : memref<1x1x1x16xf32, #tpu.memory_space<vmem>>, vector<1x1x1x16xf32>
    %21 = vector.shape_cast %20 : vector<1x1x1x16xf32> to vector<1x16xf32>
    %22 = vector.shape_cast %19 : vector<1x16xf32> to vector<1x1x1x16xf32>
    tpu.vector_store %arg7[%c0_17, %c0_18, %c0_19, %c0_20], %22 {strides = array<i32>} : memref<1x1x1x16xf32, #tpu.memory_space<vmem>>, vector<1x1x1x16xf32>,
    return
  }
  func.func @transform_0(%arg0: i32, %arg1: i32) -> (i32, i32, i32) {
    %c0_i32 = arith.constant 0 : i32
    %c0_i32_0 = arith.constant 0 : i32
    return %arg1, %arg0, %c0_i32 : i32, i32, i32
  }
  func.func @transform_1(%arg0: i32, %arg1: i32) -> (i32, i32, i32) {
    %c0_i32 = arith.constant 0 : i32
    %c0_i32_0 = arith.constant 0 : i32
    %c0_i32_1 = arith.constant 0 : i32
    return %arg1, %c0_i32, %c0_i32_0 : i32, i32, i32
  }
  func.func @transform_2(%arg0: i32, %arg1: i32) -> (i32, i32, i32) {
    %c0_i32 = arith.constant 0 : i32
    %c0_i32_0 = arith.constant 0 : i32
    %c0_i32_1 = arith.constant 0 : i32
    return %arg1, %c0_i32, %c0_i32_0 : i32, i32, i32
  }
  func.func @transform_3(%arg0: i32, %arg1: i32) -> (i32, i32, i32) {
    %c0_i32 = arith.constant 0 : i32
    %c0_i32_0 = arith.constant 0 : i32
    return %arg1, %arg0, %c0_i32 : i32, i32, i32
  }
  func.func @transform_4(%arg0: i32, %arg1: i32) -> (i32, i32, i32, i32) {
    %c0_i32 = arith.constant 0 : i32
    %c0_i32_0 = arith.constant 0 : i32
    %c0_i32_1 = arith.constant 0 : i32
    return %arg1, %arg0, %c0_i32, %c0_i32_0 : i32, i32, i32, i32
  }
  func.func @transform_5(%arg0: i32, %arg1: i32) -> (i32, i32, i32, i32) {
    %c0_i32 = arith.constant 0 : i32
    %c0_i32_0 = arith.constant 0 : i32
    %c0_i32_1 = arith.constant 0 : i32
    return %arg1, %arg0, %c0_i32, %c0_i32_0 : i32, i32, i32, i32
  }
}

</mosaic_0001>

<bundles_post_ra>
// kernel: tpu_custom_call.1
= control target key start
LH: loop header
LB: loop body
LE: loop exit
PB: predicated region body
PF: predicated region fallthrough
CT: control target
= control target key end

     0   :  { %11 = vsyncpa [#allocation3], 0  ;;  %s1115_s0 = inlined_call_operand.vmem [shape: f32[3,32,16], index: 0, kind: input, shape index: {}]   ;;  %s1116_s1 = inlined_call_operand.vmem [shape: f32[3,16,16], index: 1, kind: input, shape index: {}]   ;;  %s1117_s2 = inlined_call_operand.vmem [shape: f32[3,1,16], index: 2, kind: input, shape index: {}]   ;;  %s1118_s3 = inlined_call_operand.vmem [shape: f32[3,32,16], index: 3, kind: output, shape index: {0}]   ;;  %s1119_s4 = inlined_call_operand.hbm [shape: f32[3,2,1,16], index: 4, kind: output, shape index: {1}]   ;;  %s1120_s5 = inlined_call_operand.hbm [shape: f32[3,2,1,16], index: 5, kind: output, shape index: {2}]  }
   0x1   :  { %13 = vsyncpa [#allocation3 + $0x1], 0 }
   0x2   :  { %14 = vsyncpa [#allocation5], 0 }
   0x3   :  { %16 = vsyncpa [#allocation5 + $0x1], 0  ;;  %s922_s18 = smov 0   ;;  %s924_s19 = smov 0  }
   0x4   :  { %s926_s20 = smov 0   ;;  %s928_s21 = smov 0  }
   0x5   :  { %s930_s22 = smov 0   ;;  %s932_s23 = smov 0  }
   0x6   :  { %s934_s24 = smov 0   ;;  %s936_s25 = smov 0  }
   0x7 LB: > { %s648_s26 = sadd.s32 4294967295, %s888_s25   ;;  %s649_s27 = sadd.s32 4294967294, %s888_s25   ;;  %s888_s25 = sphi %s936_s25, %s22_s25   ;;  %s884_s24 = sphi %s934_s24, %s1131_s24   ;;  %s880_s23 = sphi %s932_s23, %s1130_s23   ;;  %s876_s22 = sphi %s930_s22, %s1129_s22   ;;  %s872_s21 = sphi %s928_s21, %s1128_s21   ;;  %s868_s20 = sphi %s926_s20, %s1127_s20   ;;  %s864_s19 = sphi %s924_s19, %s1126_s19   ;;  %s860_s18 = sphi %s922_s18, %s1125_s18  }
   0x8   : > { %s31_s28 = sadd.s32 1, %s880_s23  ;;  %s34_s29 = sadd.s32 1, %s884_s24 }
   0x9   : > { %p32_p0 = scmp.ge.s32.totalorder %s31_s28, 3  ;;  %p161_p1 = scmp.ne.s32.totalorder %s868_s20, %s864_s19 }
   0xa   : > { %p162_p2 = scmp.eq.s32.totalorder %s648_s26, 5  ;;  %p167_p5 = scmp.ne.s32.totalorder %s864_s19, %s860_s18 }
   0xb   : > { %s1133_s28 = smov (%p32_p0, %s31_s28), 0  ;;  %s1135_s29 = smov (!%p32_p0, %s34_s29), %s884_s24 }
   0xc   : > { %s146_s30 = ssub.s32 %s880_s23, %s1133_s28  ;;  %p973_p3 = por %p162_p2, %p161_p1 }
   0xd   : > { %p36_p4 = scmp.ge.s32.totalorder %s1135_s29, 2  ;;  %p168_p6 = scmp.eq.s32.totalorder %s649_s27, 5 }
   0xe   : > { %p652_p7 = scmp.ge.s32.totalorder %s888_s25, 1  ;;  %p241_p9 = scmp.lt.s32.totalorder %s888_s25, 7 }
   0xf   : > { %s1137_s29 = smov (%p36_p4, %s1135_s29), 0  ;;  %p982_p8 = por %p168_p6, %p167_p5 }
  0x10   : > { %s147_s8 = ssub.s32 %s884_s24, %s1137_s29  ;;  %s151_s9 = sadd.s32 1, %s868_s20 }
  0x11   : > { %s148_s10 = sor.u32 %s147_s8, %s146_s30  ;;  %p242_p10 = pnand %p652_p7, %p241_p9 }
  0x12   : > { %p149_p11 = scmp.eq.s32.totalorder %s148_s10, 0  ;;  %p294_p12 = scmp.lt.s32.totalorder (!%p242_p10), %s872_s21, 2  ;;  %vm332_vm0 = vcmask (!%p242_p10), 130048   ;;  %vm425_vm1 = vcmask (!%p242_p10), 122880  }
  0x13   : > { %245 = sbr.rel (%p242_p10) target bundleno = 304 (0x130), region = 32  ;;  %s653_s12 = sshll.u32 (!%p242_p10), %s876_s22, 1 }
  0x14   : > { %s991_s11 = scalar_select %p149_p11, %s868_s20, %s151_s9  }
  0x15   : > { %p296_p13 = scmp.lt.s32.totalorder (!%p242_p10), %s653_s12, 3 }
  0x1a   : > { %s295_s13 = scalar_select %p294_p12, %s872_s21, 2 }
  0x1b   : > { %s1139_s12 = smov (!%p296_p13, %s653_s12), 3 }
  0x1c   : > { %s670_s14 = sshll.u32 %s295_s13, 4  ;;  %s654_s15 = sshll.u32 %s295_s13, 2 }
  0x1d   : > { %s307_s26 = scalar_lea.vmem %s1116_s1, %s670_s14  ;;  %s299_s27 = sadd.s32 %s654_s15, %s1139_s12 }
  0x1e   : > { %v323_v0 = vld [vmem:[%s307_s26] sm:$0xff]  ;;  %v324_v1 = vld [vmem:[%s307_s26 + $0x8] sm:$0xff]  ;;  %s655_s30 = sshll.u32 %s299_s27, 3  ;;  %s310_s12 = scalar_lea.vmem %s1117_s2, %s295_s13 }
  0x1f   : > { %v682_v2 = vpack.c.bf16 %v324_v1, %v323_v0  ;;  %s301_s10 = scalar_lea.vmem %s1115_s0, %s655_s30  ;;  %v661_v5 = vld [vmem:[%s310_s12] ss:$0 sm:$0xff]  ;;  %s319_s26 = scalar_lea.vmem %s1118_s3, %s655_s30 }
  0x20   : > { %v321_v3 = vld [vmem:[%s301_s10] sm:$0xff]  ;;  %v322_v4 = vld [vmem:[%s301_s10 + $0x8] sm:$0xff]  ;;  %s1017_s13 = sand.u32 1, %s864_s19   ;;  %s664_s27 = sshll.u32 %s872_s21, 1 }
  0x21   : > { %683 = vmatprep.subr.bf16.mxu0 %v682_v2  ;;  %679 = vmatprep.mubr.msk.f32.mxu0 %vm332_vm0, %v321_v3  ;;  %s467_s30 = sadd.s32 %s876_s22, %s664_s27  ;;  %s286_s9 = scalar_lea.vmem [#allocation2], %s1017_s13 }
  0x22   : > { %685 = vmatpush3.bf16.msra.mxu0 %v682_v2  ;;  %s665_s8 = sshll.u32 %s467_s30, 4  ;;  %s471_s10 = sshll.u32 %s286_s9, 4  ;;  %s1030_s10 = int_to_ptr.vmem [resolvable:$true] %s471_s10 }
  0x23   : > { %s1121_s16 = scalar_lea.vmem [#allocation4], %s1017_s13  ;;  %s1028_s15 = scalar_lea.hbm %s1119_s4, %s665_s8 }
  0x24   : > { %s486_s14 = sshll.u32 %s1121_s16, 4  ;;  %s449_s27 = scalar_lea.sflag [#allocation3], %s1017_s13  ;;  %s1038_s14 = int_to_ptr.vmem [resolvable:$true] %s486_s14 }
  0x25   : > { %680 = vmatmul.mubr.msk.f32.vlgmr.msra.gmra.mrb[0].mxu0 %vm332_vm0, %v322_v4  ;;  %s762_s30 = scalar_lea.vmem %s1030_s10, 16  ;;  %s890_s21 = smov [#allocation2]  }
  0x26   : > { %p763_p0 = scmp.ne.s32.totalorder %s1030_s10, %s762_s30  ;;  %s766_s12 = sshll.u32 %s890_s21, 4  ;;  %s767_s12 = int_to_ptr.vmem [resolvable:$false] %s766_s12 }
  0x27   : > { %s768_s16 = scalar_lea.vmem %s767_s12, 32  ;;  %p769_p4 = scmp.lt.s32.totalorder %s1030_s10, %s767_s12 }
  0x28   : > { %p764_p1 = pnand %p763_p0, %p973_p3  ;;  %p770_p5 = scmp.lt.s32.totalorder %s768_s16, %s762_s30 }
  0x2a   : > { %p765_p2 = pneg %p764_p1  ;;  %p771_p6 = por %p770_p5, %p769_p4 }
  0x2c   : > { %p772_p7 = pnand %p771_p6, %p765_p2 }
  0xf8   : > { %v681_v6 = vpop.f32.mrb[0].mxu0 }
  0xf9   : > { %v411_v7 = vadd.f32 %v681_v6, %v661_v5  ;;  %v405_v8 = vpop.f32.mrb[1].mxu0 }
  0xfa   : > { %v406_v9 = vadd.f32 %v661_v5, %v405_v8 }
  0xfb   : > { %415 = vst.msk [vmem:[%s319_s26 + $0x8] sm:$0xff] %vm332_vm0, %v411_v7  ;;  %v417_v10 = vsel %vm332_vm0, %v411_v7, 0.0  ;;  %v428_v11 = vmul.f32 %v411_v7, %v411_v7 }
  0xfc   : > { %414 = vst.msk [vmem:[%s319_s26] sm:$0xff] %vm332_vm0, %v406_v9  ;;  %v416_v12 = vsel %vm332_vm0, %v406_v9, 0.0  ;;  %v427_v13 = vmul.f32 %v406_v9, %v406_v9  ;;  %s1036_s26 = scalar_lea.hbm %s1120_s5, %s665_s8 }
  0xfd   : > { %v430_v14 = vsel %vm332_vm0, %v428_v11, 0.0  ;;  %v418_v15 = vadd.f32 %v417_v10, %v416_v12 }
  0xfe   : > { %v429_v16 = vsel %vm332_vm0, %v427_v13, 0.0 }
  0xff   : > { %v419_v17 = vrot.slane %v418_v15, 4  ;;  %v431_v18 = vadd.f32 %v430_v14, %v429_v16 }
 0x101   : > { %v420_v19 = vadd.f32 %v419_v17, %v418_v15  ;;  %v432_v20 = vrot.slane %v431_v18, 4 }
 0x103   : > { %v421_v21 = vrot.slane %v420_v19, 2  ;;  %v433_v22 = vadd.f32 %v432_v20, %v431_v18 }
 0x105   : > { %v422_v23 = vadd.f32 %v421_v21, %v420_v19  ;;  %v434_v24 = vrot.slane %v433_v22, 2 }
 0x107   : > { %v423_v25 = vrot.slane %v422_v23, 1  ;;  %v435_v26 = vadd.f32 %v434_v24, %v433_v22 }
 0x109   : > { %v424_v27 = vadd.f32 %v423_v25, %v422_v23  ;;  %v436_v28 = vrot.slane %v435_v26, 1 }
 0x10b   : > { %426 = vst.msk [vmem:[%s286_s9] sm:$0x1] %vm425_vm1, %v424_v27  ;;  %v437_v29 = vadd.f32 %v436_v28, %v435_v26 }
 0x10c   : > { %775 = shalt.err (!%p772_p7)
}
 0x10d   : > { %s776_s8 = scalar_lea.hbm %s1028_s15, 16  ;;  %s780_s17 = scalar_lea.hbm %s1119_s4, 96 }
 0x10e   : > { %p777_p9 = scmp.ne.s32.totalorder %s1028_s15, %s776_s8  ;;  %p781_p12 = scmp.lt.u32.totalorder %s1028_s15, %s1119_s4 }
 0x10f   : > { %p782_p13 = scmp.lt.u32.totalorder %s780_s17, %s776_s8  ;;  %p784_p1 = scmp.lt.u32.totalorder %s776_s8, %s1028_s15 }
 0x110   : > { %p778_p10 = pnand %p777_p9, %p973_p3 }
 0x111   : > { %p783_p0 = por %p782_p13, %p781_p12 }
 0x112   : > { %p779_p11 = pneg %p778_p10 }
 0x113   : > { %p785_p2 = por %p784_p1, %p783_p0 }
 0x115   : > { %p786_p4 = pnand %p785_p2, %p779_p11 }
 0x117   : > { %789 = shalt.err (!%p786_p4)
}
 0x118   : > { %686 = dma.vmem_to_hbm [thread:$0]  (%p973_p3), %s1030_s10, 16, %s1028_s15, %s449_s27  }
 0x119   : > { %s1124_s16 = scalar_lea.vmem [#allocation4], %s1017_s13  ;;  %s453_s30 = scalar_lea.sflag [#allocation5], %s1017_s13 }
 0x11a   : > { %438 = vst.msk [vmem:[%s1124_s16] sm:$0x1] %vm425_vm1, %v437_v29  ;;  %s790_s9 = scalar_lea.vmem %s1038_s14, 16  ;;  %s891_s8 = smov [#allocation4]  }
 0x11b   : > { %p791_p5 = scmp.ne.s32.totalorder %s1038_s14, %s790_s9  ;;  %s794_s22 = sshll.u32 %s891_s8, 4  ;;  %s795_s22 = int_to_ptr.vmem [resolvable:$false] %s794_s22 }
 0x11c   : > { %s796_s17 = scalar_lea.vmem %s795_s22, 32  ;;  %p797_p9 = scmp.lt.s32.totalorder %s1038_s14, %s795_s22 }
 0x11d   : > { %p792_p6 = pnand %p791_p5, %p973_p3  ;;  %p798_p10 = scmp.lt.s32.totalorder %s796_s17, %s790_s9 }
 0x11f   : > { %p793_p7 = pneg %p792_p6  ;;  %p799_p11 = por %p798_p10, %p797_p9 }
 0x121   : > { %p800_p12 = pnand %p799_p11, %p793_p7 }
 0x123   : > { %803 = shalt.err (!%p800_p12)
}
 0x124   : > { %s804_s13 = scalar_lea.hbm %s1036_s26, 16  ;;  %s808_s27 = scalar_lea.hbm %s1120_s5, 96 }
 0x125   : > { %p805_p13 = scmp.ne.s32.totalorder %s1036_s26, %s804_s13  ;;  %p809_p2 = scmp.lt.u32.totalorder %s1036_s26, %s1120_s5 }
 0x126   : > { %p810_p4 = scmp.lt.u32.totalorder %s808_s27, %s804_s13  ;;  %p812_p6 = scmp.lt.u32.totalorder %s804_s13, %s1036_s26 }
 0x127   : > { %p806_p0 = pnand %p805_p13, %p973_p3 }
 0x128   : > { %p811_p5 = por %p810_p4, %p809_p2 }
 0x129   : > { %p807_p1 = pneg %p806_p0 }
 0x12a   : > { %p813_p7 = por %p812_p6, %p811_p5 }
 0x12c   : > { %p814_p9 = pnand %p813_p7, %p807_p1 }
 0x12e   : > { %817 = shalt.err (!%p814_p9)
}
 0x12f   : > { %687 = dma.vmem_to_hbm [thread:$0]  (%p973_p3), %s1038_s14, 16, %s1036_s26, %s453_s30  }
 0x130 PF: > { %p697_p10 = scmp.ge.s32.totalorder %s888_s25, 2  ;;  %s510_s16 = sand.u32 1, %s860_s18  }
 0x131   : > { %s511_s9 = scalar_lea.sflag [#allocation3], %s510_s16 }
 0x132   : > { %p691_p11 = pnand %p697_p10, %p982_p8 }
 0x134   : > { %851 = dma.done.wait (!%p691_p11), %s511_s9, 16  }
 0x135   : > { %853 = vsyncadd (!%p691_p11), %s511_s9, 4294967280  ;;  %s519_s8 = scalar_lea.sflag [#allocation5], %s510_s16 }
 0x136   : > { %855 = dma.done.wait (!%p691_p11), %s519_s8, 16  }
 0x137   : > { %857 = vsyncadd (!%p691_p11), %s519_s8, 4294967280  ;;  %s22_s25 = sadd.s32 1, %s888_s25   ;;  %s1125_s18 = smov %s864_s19 }
 0x138   : > { %p19_p12 = scmp.ge.s32.totalorder %s22_s25, 8   ;;  %s1126_s19 = smov %s868_s20 }
 0x139   : > { %s1127_s20 = smov %s991_s11  ;;  %s1128_s21 = smov %s880_s23 }
 0x13a   : > { %s1129_s22 = smov %s884_s24  ;;  %s1130_s23 = smov %s1133_s28 }
 0x13b   : > { %s1131_s24 = smov %s1137_s29  ;;  %21 = sbr.rel (!%p19_p12) target bundleno = 7 (0x7), region = 102 }
 0x142   :  { %523 = vsyncpa [#allocation3], 1 }
 0x143   :  { %525 = vsyncpa [#allocation3 + $0x1], 1 }
 0x144   :  { %526 = vsyncpa [#allocation5], 1 }
 0x145   :  { %528 = vsyncpa [#allocation5 + $0x1], 1 }

</bundles_post_ra>
